<compile_context>
chip_gen: v7x
topology: tpu7x:2x2x1
jax: 0.10.0
libtpu: 0.0.40
codegen_flags: <defaults>
</compile_context>

<pallas_src>
import math

import jax
import jax.numpy as jnp
from jax.experimental import pallas as pl
from jax.experimental.pallas import tpu as pltpu


# ----------------------------------------------------------------------------- kernel
def lens_layer_kernel(fr_ref, fi_ref, hr_ref, hi_ref, or_ref, oi_ref):
    fr = fr_ref[...]
    fi = fi_ref[...]
    hr = hr_ref[...]
    hi = hi_ref[...]
    # Complex matmul as 4 real MXU dots (f32 accumulation) + VPU adds.
    rr = jnp.dot(fr, hr, preferred_element_type=jnp.float32)
    ii = jnp.dot(fi, hi, preferred_element_type=jnp.float32)
    ri = jnp.dot(fr, hi, preferred_element_type=jnp.float32)
    ir = jnp.dot(fi, hr, preferred_element_type=jnp.float32)
    or_ref[...] = rr - ii
    oi_ref[...] = ri + ir


def _pick_tile(total, preferred, want_multiple_blocks=False):
    """Largest preferred tile that evenly divides `total`; optionally prefer a tile
    that yields >= 2 blocks (so a 'parallel' axis can shard across v7x's 2 TCs)."""
    divisors = [t for t in preferred if t <= total and total % t == 0]
    if want_multiple_blocks:
        for t in divisors:
            if total // t >= 2:
                return t
    if divisors:
        return divisors[0]
    return total  # full extent (legal: block == full array dim)


def lens_layer_forward(field_r, field_i, h_r, h_i):
    """field_{r,i}: (B, dim_in) f32; h_{r,i}: (dim_in, dim_out) f32 (lens folded in).

    Returns (out_r, out_i) each (B, dim_out) f32, emitted directly by the kernel.
    """
    B, dim_in = field_r.shape
    K, dim_out = h_r.shape
    assert K == dim_in and h_i.shape == (dim_in, dim_out)

    tb = _pick_tile(B, (256, 128, 64, 32, 16, 8))
    # Prefer >= 2 N blocks when dim_out allows it (v7x megacore); 128-lane minimum
    # keeps output stores unmasked.
    tn = _pick_tile(dim_out, (512, 256, 128), want_multiple_blocks=(dim_out >= 256))
    grid = (dim_out // tn, B // tb)  # batch innermost: Hr/Hi tiles stay VMEM-resident

    # Double-buffered per-step VMEM footprint (f32): fr, fi, hr, hi tiles + 2 outputs.
    tile_bytes = 4 * (2 * tb * dim_in + 2 * dim_in * tn + 2 * tb * tn)
    vmem_limit = min(max(2 * tile_bytes * 2, 32 * 1024 * 1024), 40 * 1024 * 1024)

    cost = pl.CostEstimate(
        flops=8 * B * dim_in * dim_out,  # 4 real matmuls
        transcendentals=0,
        bytes_accessed=4 * (2 * B * dim_in + 2 * dim_in * dim_out + 2 * B * dim_out),
    )

    out_r, out_i = pl.pallas_call(
        lens_layer_kernel,
        out_shape=(
            jax.ShapeDtypeStruct((B, dim_out), jnp.float32),
            jax.ShapeDtypeStruct((B, dim_out), jnp.float32),
        ),
        grid_spec=pltpu.PrefetchScalarGridSpec(
            num_scalar_prefetch=0,
            grid=grid,
            in_specs=[
                # field planes: depend only on the batch tile (inner axis)
                pl.BlockSpec((tb, dim_in), lambda j, i: (i, 0)),
                pl.BlockSpec((tb, dim_in), lambda j, i: (i, 0)),
                # H planes: depend only on the output tile (outer axis) -> resident
                # in VMEM while the inner batch axis advances
                pl.BlockSpec((dim_in, tn), lambda j, i: (0, j)),
                pl.BlockSpec((dim_in, tn), lambda j, i: (0, j)),
            ],
            out_specs=(
                pl.BlockSpec((tb, tn), lambda j, i: (i, j)),
                pl.BlockSpec((tb, tn), lambda j, i: (i, j)),
            ),
        ),
        compiler_params=pltpu.CompilerParams(
            dimension_semantics=("parallel", "parallel"),
            vmem_limit_bytes=vmem_limit),
        cost_estimate=cost,
    )(field_r, field_i, h_r, h_i)

    return out_r, out_i


# ------------------------------------------------------------------- parameter setup
def make_lens_modulation_profile(dim_in, pixel_size, wavelength, focal_length):
    """Mirrors LensLayer._calculate_lens_modulation_profile (1-D lens phase)."""
    lens_size = pixel_size * dim_in
    xv = jnp.linspace((-lens_size + pixel_size) / 2.0,
                      (lens_size - pixel_size) / 2.0, dim_in)
    radius = jnp.abs(xv)
    theta = -math.pi / (wavelength * focal_length) * radius ** 2
    pr = jnp.cos(theta)
    pim = jnp.sin(theta)
    # Strict '>' in the original never triggers on this grid; add a tiny relative
    # epsilon so a 1-ulp linspace endpoint excess can't zero the edge pixels.
    edge = (lens_size - pixel_size) / 2.0
    mask = radius > edge * (1.0 + 1e-6)
    pr = jnp.where(mask, 0.0, pr).astype(jnp.float32)
    pim = jnp.where(mask, 0.0, pim).astype(jnp.float32)
    return pr, pim                                   # each (dim_in,)


def make_fresnel_propagation_matrix(dim_in, dim_out, pixel_size, wavelength, z):
    """1-D Fresnel propagation matrix H[dim_in, dim_out] (real, imag float32)."""
    size_in = pixel_size * dim_in
    size_out = pixel_size * dim_out
    x_in = jnp.linspace((-size_in + pixel_size) / 2.0,
                        (size_in - pixel_size) / 2.0, dim_in)
    x_out = jnp.linspace((-size_out + pixel_size) / 2.0,
                         (size_out - pixel_size) / 2.0, dim_out)
    dxx = x_out[None, :] - x_in[:, None]                       # (dim_in, dim_out)
    amp = pixel_size / jnp.sqrt(wavelength * z)
    phase = math.pi * dxx ** 2 / (wavelength * z) - math.pi / 4.0
    hr = (amp * jnp.cos(phase)).astype(jnp.float32)
    hi = (amp * jnp.sin(phase)).astype(jnp.float32)
    return hr, hi


def make_folded_propagation(mod_r, mod_i, prop_r, prop_i):
    """One-time parameter precompute: H' = diag(mod) @ H, stored ONCE as (Hr', Hi').

    No per-element lens work remains in the kernel, and H bytes are not duplicated.
    """
    hr = mod_r[:, None] * prop_r - mod_i[:, None] * prop_i     # Re(H')
    hi = mod_r[:, None] * prop_i + mod_i[:, None] * prop_r     # Im(H')
    return hr.astype(jnp.float32), hi.astype(jnp.float32)      # each (dim_in, dim_out)


# ------------------------------------------------------------------------------ main
if __name__ == "__main__":
    # Module hyper-parameters (small, self-consistent optics values)
    dim_in = 128
    dim_out = 128
    pixel_size = 8e-6
    wavelength = 750e-9
    layer_distance = 0.03
    samples_per_pixel = 1            # TODO(synk): per-pixel supersampling not modeled
    propagation_method = "fresnel"
    focal_length = 0.05
    batch = 8

    # Deterministic parameters / buffers
    mod_r, mod_i = make_lens_modulation_profile(dim_in, pixel_size, wavelength,
                                                focal_length)
    prop_r, prop_i = make_fresnel_propagation_matrix(dim_in, dim_out, pixel_size,
                                                     wavelength, layer_distance)
    h_r, h_i = make_folded_propagation(mod_r, mod_i, prop_r, prop_i)

    # Deterministic complex input field
    key = jax.random.PRNGKey(0)
    kr, ki = jax.random.split(key)
    field_r = jax.random.normal(kr, (batch, dim_in), dtype=jnp.float32)
    field_i = jax.random.normal(ki, (batch, dim_in), dtype=jnp.float32)

    out_r, out_i = lens_layer_forward(field_r, field_i, h_r, h_i)
    jax.block_until_ready(out_r)
    jax.block_until_ready(out_i)

    # Reference check in plain JAX complex arithmetic (original module semantics:
    # modulate by the lens profile, then propagate).
    field_c = field_r + 1j * field_i
    mod_c = mod_r + 1j * mod_i
    prop_c = prop_r + 1j * prop_i
    ref = (field_c * mod_c[None, :]) @ prop_c
    assert jnp.allclose(out_r, ref.real, atol=1e-3, rtol=1e-3)
    assert jnp.allclose(out_i, ref.imag, atol=1e-3, rtol=1e-3)

    print("KERNEL_OK")
</pallas_src>

<mosaic_0001>
module attributes {stable_mosaic.version = 11 : i64} {
  func.func @lens_layer_kernel(%arg0: i32, %arg1: i32, %arg2: memref<8x128xf32, #tpu.memory_space<vmem>>, %arg3: memref<8x128xf32, #tpu.memory_space<vmem>>, %arg4: memref<128x128xf32, #tpu.memory_space<vmem>>, %arg5: memref<128x128xf32, #tpu.memory_space<vmem>>, %arg6: memref<8x128xf32, #tpu.memory_space<vmem>>, %arg7: memref<8x128xf32, #tpu.memory_space<vmem>>) attributes {dimension_semantics = [#tpu.dimension_semantics<parallel>, #tpu.dimension_semantics<parallel>], iteration_bounds = array<i64: 1, 1>, scalar_prefetch = 0 : i64, scratch_operands = 0 : i64, tpu.core_type = #tpu.core_type<tc>, window_params = [{transform_indices = @transform_0, window_bounds = array<i64: 8, 128>}, {transform_indices = @transform_1, window_bounds = array<i64: 8, 128>}, {transform_indices = @transform_2, window_bounds = array<i64: 128, 128>}, {transform_indices = @transform_3, window_bounds = array<i64: 128, 128>}, {transform_indices = @transform_4, window_bounds = array<i64: 8, 128>}, {transform_indices = @transform_5, window_bounds = array<i64: 8, 128>}]} {
    %c0 = arith.constant 0 : index
    %c0_0 = arith.constant 0 : index
    %0 = vector.load %arg2[%c0, %c0_0] : memref<8x128xf32, #tpu.memory_space<vmem>>, vector<8x128xf32>
    %c0_1 = arith.constant 0 : index
    %c0_2 = arith.constant 0 : index
    %1 = vector.load %arg3[%c0_1, %c0_2] : memref<8x128xf32, #tpu.memory_space<vmem>>, vector<8x128xf32>
    %c0_3 = arith.constant 0 : index
    %c0_4 = arith.constant 0 : index
    %2 = vector.load %arg4[%c0_3, %c0_4] : memref<128x128xf32, #tpu.memory_space<vmem>>, vector<128x128xf32>
    %c0_5 = arith.constant 0 : index
    %c0_6 = arith.constant 0 : index
    %3 = vector.load %arg5[%c0_5, %c0_6] : memref<128x128xf32, #tpu.memory_space<vmem>>, vector<128x128xf32>
    %cst = arith.constant dense<0.000000e+00> : vector<8x128xf32>
    %4 = tpu.matmul %0, %2, %cst {dimension_numbers = #tpu.dot_dimension_numbers<[1], [0], [0], [1], [0, 0, 1, 1], [], []>} : vector<8x128xf32>, vector<128x128xf32>, vector<8x128xf32> -> vector<8x128xf32>
    %cst_7 = arith.constant dense<0.000000e+00> : vector<8x128xf32>
    %5 = tpu.matmul %1, %3, %cst_7 {dimension_numbers = #tpu.dot_dimension_numbers<[1], [0], [0], [1], [0, 0, 1, 1], [], []>} : vector<8x128xf32>, vector<128x128xf32>, vector<8x128xf32> -> vector<8x128xf32>
    %cst_8 = arith.constant dense<0.000000e+00> : vector<8x128xf32>
    %6 = tpu.matmul %0, %3, %cst_8 {dimension_numbers = #tpu.dot_dimension_numbers<[1], [0], [0], [1], [0, 0, 1, 1], [], []>} : vector<8x128xf32>, vector<128x128xf32>, vector<8x128xf32> -> vector<8x128xf32>
    %cst_9 = arith.constant dense<0.000000e+00> : vector<8x128xf32>
    %7 = tpu.matmul %1, %2, %cst_9 {dimension_numbers = #tpu.dot_dimension_numbers<[1], [0], [0], [1], [0, 0, 1, 1], [], []>} : vector<8x128xf32>, vector<128x128xf32>, vector<8x128xf32> -> vector<8x128xf32>
    %8 = arith.subf %4, %5 : vector<8x128xf32>
    %c0_10 = arith.constant 0 : index
    %c0_11 = arith.constant 0 : index
    %9 = vector.load %arg6[%c0_10, %c0_11] : memref<8x128xf32, #tpu.memory_space<vmem>>, vector<8x128xf32>
    tpu.vector_store %arg6[%c0_10, %c0_11], %8 {strides = array<i32>} : memref<8x128xf32, #tpu.memory_space<vmem>>, vector<8x128xf32>,
    %10 = arith.addf %6, %7 : vector<8x128xf32>
    %c0_12 = arith.constant 0 : index
    %c0_13 = arith.constant 0 : index
    %11 = vector.load %arg7[%c0_12, %c0_13] : memref<8x128xf32, #tpu.memory_space<vmem>>, vector<8x128xf32>
    tpu.vector_store %arg7[%c0_12, %c0_13], %10 {strides = array<i32>} : memref<8x128xf32, #tpu.memory_space<vmem>>, vector<8x128xf32>,
    return
  }
  func.func @transform_0(%arg0: i32, %arg1: i32) -> (i32, i32) {
    %c0_i32 = arith.constant 0 : i32
    %c0_i32_0 = arith.constant 0 : i32
    return %arg1, %c0_i32 : i32, i32
  }
  func.func @transform_1(%arg0: i32, %arg1: i32) -> (i32, i32) {
    %c0_i32 = arith.constant 0 : i32
    %c0_i32_0 = arith.constant 0 : i32
    return %arg1, %c0_i32 : i32, i32
  }
  func.func @transform_2(%arg0: i32, %arg1: i32) -> (i32, i32) {
    %c0_i32 = arith.constant 0 : i32
    %c0_i32_0 = arith.constant 0 : i32
    return %c0_i32, %arg0 : i32, i32
  }
  func.func @transform_3(%arg0: i32, %arg1: i32) -> (i32, i32) {
    %c0_i32 = arith.constant 0 : i32
    %c0_i32_0 = arith.constant 0 : i32
    return %c0_i32, %arg0 : i32, i32
  }
  func.func @transform_4(%arg0: i32, %arg1: i32) -> (i32, i32) {
    %c0_i32 = arith.constant 0 : i32
    return %arg1, %arg0 : i32, i32
  }
  func.func @transform_5(%arg0: i32, %arg1: i32) -> (i32, i32) {
    %c0_i32 = arith.constant 0 : i32
    return %arg1, %arg0 : i32, i32
  }
}

</mosaic_0001>

<bundles_post_ra>
// kernel: tpu_custom_call.1
= control target key start
LH: loop header
LB: loop body
LE: loop exit
PB: predicated region body
PF: predicated region fallthrough
CT: control target
= control target key end

     0   :  { %11 = vsyncpa [#allocation3], 0  ;;  %s1032_s0 = inlined_call_operand.hbm [shape: f32[8,128], index: 0, kind: input, shape index: {}]   ;;  %s1033_s1 = inlined_call_operand.hbm [shape: f32[8,128], index: 1, kind: input, shape index: {}]   ;;  %s1034_s2 = inlined_call_operand.hbm [shape: f32[128,128], index: 2, kind: input, shape index: {}]   ;;  %s1035_s3 = inlined_call_operand.hbm [shape: f32[128,128], index: 3, kind: input, shape index: {}]   ;;  %s1036_s4 = inlined_call_operand.hbm [shape: f32[8,128], index: 4, kind: output, shape index: {0}]   ;;  %s1037_s5 = inlined_call_operand.hbm [shape: f32[8,128], index: 5, kind: output, shape index: {1}]  }
   0x1   :  { %12 = vsyncpa [#allocation6], 0 }
   0x2   :  { %13 = vsyncpa [#allocation9], 0 }
   0x3   :  { %14 = vsyncpa [#allocation4], 0 }
   0x4   :  { %15 = vsyncpa [#allocation12], 0  ;;  %s879_s18 = smov [#allocation5]   ;;  %s880_s20 = smov [#allocation2]  }
   0x5   :  { %s32_s19 = sshll.u32 %s879_s18, 4  ;;  %s22_s21 = sshll.u32 %s880_s20, 4  ;;  %s33_s19 = int_to_ptr.vmem [resolvable:$true] %s32_s19  ;;  %s23_s21 = int_to_ptr.vmem [resolvable:$true] %s22_s21 }
   0x6   :  { %s737_s24 = scalar_lea.hbm %s1033_s1, 128 }
   0x7   :  { %p738_p0 = scmp.ne.s32.totalorder %s1033_s1, %s737_s24  ;;  %p741_p1 = scmp.lt.u32.totalorder %s737_s24, %s1033_s1 }
   0x9   :  { %p743_p2 = pnand %p741_p1, %p738_p0 }
   0xb   :  { %746 = shalt.err (!%p743_p2)
}
   0xc   :  { %s747_s29 = scalar_lea.vmem %s33_s19, 128  ;;  %p752_p4 = scmp.lt.s32.totalorder %s33_s19, %s33_s19 }
   0xd   :  { %p748_p3 = scmp.ne.s32.totalorder %s33_s19, %s747_s29  ;;  %p753_p5 = scmp.lt.s32.totalorder %s747_s29, %s747_s29 }
   0xf   :  { %p754_p6 = por %p753_p5, %p752_p4 }
  0x11   :  { %p755_p7 = pnand %p754_p6, %p748_p3 }
  0x13   :  { %758 = shalt.err (!%p755_p7)
}
  0x14   :  { %35 = dma.hbm_to_vmem [thread:$0]  %s1033_s1, 128, %s33_s19, [#allocation6]  }
  0x15   :  { %s759_s9 = scalar_lea.hbm %s1032_s0, 128 }
  0x16   :  { %p760_p8 = scmp.ne.s32.totalorder %s1032_s0, %s759_s9  ;;  %p763_p9 = scmp.lt.u32.totalorder %s759_s9, %s1032_s0 }
  0x18   :  { %p765_p10 = pnand %p763_p9, %p760_p8 }
  0x1a   :  { %768 = shalt.err (!%p765_p10)
}
  0x1b   :  { %s769_s14 = scalar_lea.vmem %s23_s21, 128  ;;  %p774_p12 = scmp.lt.s32.totalorder %s23_s21, %s23_s21 }
  0x1c   :  { %p770_p11 = scmp.ne.s32.totalorder %s23_s21, %s769_s14  ;;  %p775_p13 = scmp.lt.s32.totalorder %s769_s14, %s769_s14 }
  0x1e   :  { %p776_p0 = por %p775_p13, %p774_p12 }
  0x20   :  { %p777_p1 = pnand %p776_p0, %p770_p11 }
  0x22   :  { %780 = shalt.err (!%p777_p1)
}
  0x23   :  { %25 = dma.hbm_to_vmem [thread:$0]  %s1032_s0, 128, %s23_s21, [#allocation3]  }
  0x24   :  { %s881_s16 = smov [#allocation7]   ;;  %s781_s20 = scalar_lea.hbm %s1034_s2, 2048 }
  0x25   :  { %s41_s17 = sshll.u32 %s881_s16, 4  ;;  %p782_p2 = scmp.ne.s32.totalorder %s1034_s2, %s781_s20  ;;  %s42_s17 = int_to_ptr.vmem [resolvable:$true] %s41_s17 }
  0x26   :  { %p785_p3 = scmp.lt.u32.totalorder %s781_s20, %s1034_s2 }
  0x28   :  { %p787_p4 = pnand %p785_p3, %p782_p2 }
  0x2a   :  { %790 = shalt.err (!%p787_p4)
}
  0x2b   :  { %s791_s26 = scalar_lea.vmem %s42_s17, 2048  ;;  %p796_p6 = scmp.lt.s32.totalorder %s42_s17, %s42_s17 }
  0x2c   :  { %p792_p5 = scmp.ne.s32.totalorder %s42_s17, %s791_s26  ;;  %p797_p7 = scmp.lt.s32.totalorder %s791_s26, %s791_s26 }
  0x2e   :  { %p798_p8 = por %p797_p7, %p796_p6 }
  0x30   :  { %p799_p9 = pnand %p798_p8, %p792_p5 }
  0x32   :  { %802 = shalt.err (!%p799_p9)
}
  0x33   :  { %s882_s0 = smov 128   ;;  %s883_s21 = smov 8  }
  0x34   :  { %47 = dma.hbm_to_vmem [thread:$0]  %s1034_s2, 2048, %s42_s17, [#allocation6], %s882_s0, %s882_s0, %s883_s21  }
  0x35   :  { %s884_s29 = smov [#allocation8]   ;;  %s803_s8 = scalar_lea.hbm %s1035_s3, 2048 }
  0x36   :  { %s53_s30 = sshll.u32 %s884_s29, 4  ;;  %p804_p10 = scmp.ne.s32.totalorder %s1035_s3, %s803_s8  ;;  %s54_s30 = int_to_ptr.vmem [resolvable:$true] %s53_s30 }
  0x37   :  { %p807_p11 = scmp.lt.u32.totalorder %s803_s8, %s1035_s3 }
  0x39   :  { %p809_p12 = pnand %p807_p11, %p804_p10 }
  0x3b   :  { %812 = shalt.err (!%p809_p12)
}
  0x3c   :  { %s813_s13 = scalar_lea.vmem %s54_s30, 2048  ;;  %p818_p0 = scmp.lt.s32.totalorder %s54_s30, %s54_s30 }
  0x3d   :  { %p814_p13 = scmp.ne.s32.totalorder %s54_s30, %s813_s13  ;;  %p819_p1 = scmp.lt.s32.totalorder %s813_s13, %s813_s13 }
  0x3f   :  { %p820_p2 = por %p819_p1, %p818_p0 }
  0x41   :  { %p821_p3 = pnand %p820_p2, %p814_p13 }
  0x43   :  { %824 = shalt.err (!%p821_p3)
}
  0x44   :  { %59 = dma.hbm_to_vmem [thread:$0]  %s1035_s3, 2048, %s54_s30, [#allocation9], %s882_s0, %s882_s0, %s883_s21  }
  0x45   :  { %869 = dma.done.wait [#allocation3], 128  }
  0x46   :  { %870 = vsyncadd [#allocation3], 4294967168 }
  0x47   :  { %871 = dma.done.wait [#allocation6], 2176  }
  0x48   :  { %872 = vsyncadd [#allocation6], 4294965120 }
  0x49   :  { %873 = dma.done.wait [#allocation9], 2048  }
  0x4a   :  { %874 = vsyncadd [#allocation9], 4294965248  ;;  %v885_v0 = vmov 0.0|0.0   ;;  %vm886_vm0 = vmmov 0   ;;  %v887_v1 = vmov 0.0   ;;  %v74_v2 = vld [vmem:[#allocation7] sm:$0xff] }
  0x4b   :  { %628 = vmatprep.subr.bf16.mxu1 %v885_v0  ;;  %676 = vmatprep.subr.bf16.mxu0 %v885_v0  ;;  %v75_v3 = vld [vmem:[#allocation7 + $0x8] sm:$0xff]  ;;  %v76_v4 = vld [vmem:[#allocation7 + $0x10] sm:$0xff]  ;;  %v77_v6 = vld [vmem:[#allocation7 + $0x18] sm:$0xff]  ;;  %s888_s3 = smov [#allocation11]   ;;  %s889_s15 = smov [#allocation10]  }
  0x4c   :  { %520 = vmatprep.mubr.msk.f32.mxu1 %vm886_vm0, %v887_v1  ;;  %590 = vmatprep.mubr.msk.f32.mxu0 %vm886_vm0, %v887_v1  ;;  %v629_v5 = vpack.c.bf16 %v75_v3, %v74_v2  ;;  %v632_v7 = vpack.c.bf16 %v77_v6, %v76_v4  ;;  %v78_v8 = vld [vmem:[#allocation7 + $0x20] sm:$0xff]  ;;  %v79_v9 = vld [vmem:[#allocation7 + $0x28] sm:$0xff]  ;;  %v80_v11 = vld [vmem:[#allocation7 + $0x30] sm:$0xff]  ;;  %s405_s1 = sshll.u32 %s888_s3, 4  ;;  %s395_s16 = sshll.u32 %s889_s15, 4  ;;  %s406_s1 = int_to_ptr.vmem [resolvable:$true] %s405_s1  ;;  %s396_s16 = int_to_ptr.vmem [resolvable:$true] %s395_s16 }
  0x4d   :  { %v635_v10 = vpack.c.bf16 %v79_v9, %v78_v8  ;;  %v81_v12 = vld [vmem:[#allocation7 + $0x38] sm:$0xff]  ;;  %v82_v14 = vld [vmem:[#allocation7 + $0x40] sm:$0xff]  ;;  %v83_v15 = vld [vmem:[#allocation7 + $0x48] sm:$0xff]  ;;  %s825_s17 = scalar_lea.vmem %s406_s1, 128  ;;  %p830_p5 = scmp.lt.s32.totalorder %s406_s1, %s406_s1 }
  0x4e   :  { %630 = vmatpush3.bf16.msra.mxu1 %v629_v5  ;;  %678 = vmatpush3.bf16.msra.mxu0 %v629_v5  ;;  %v638_v13 = vpack.c.bf16 %v81_v12, %v80_v11  ;;  %v641_v16 = vpack.c.bf16 %v83_v15, %v82_v14  ;;  %v84_v17 = vld [vmem:[#allocation7 + $0x50] sm:$0xff]  ;;  %v85_v18 = vld [vmem:[#allocation7 + $0x58] sm:$0xff]  ;;  %v86_v20 = vld [vmem:[#allocation7 + $0x60] sm:$0xff]  ;;  %p826_p4 = scmp.ne.s32.totalorder %s406_s1, %s825_s17  ;;  %p831_p6 = scmp.lt.s32.totalorder %s825_s17, %s825_s17 }
  0x4f   :  { %631 = vmatprep.subr.bf16.mxu1 %v885_v0  ;;  %679 = vmatprep.subr.bf16.mxu0 %v885_v0  ;;  %v644_v19 = vpack.c.bf16 %v85_v18, %v84_v17  ;;  %v87_v21 = vld [vmem:[#allocation7 + $0x68] sm:$0xff]  ;;  %v88_v23 = vld [vmem:[#allocation7 + $0x70] sm:$0xff]  ;;  %v89_v24 = vld [vmem:[#allocation7 + $0x78] sm:$0xff] }
  0x50   :  { %v647_v22 = vpack.c.bf16 %v87_v21, %v86_v20  ;;  %v650_v25 = vpack.c.bf16 %v89_v24, %v88_v23  ;;  %v90_v26 = vld [vmem:[#allocation8] sm:$0xff]  ;;  %v91_v27 = vld [vmem:[#allocation8 + $0x8] sm:$0xff]  ;;  %v72_v28 = vld [vmem:[#allocation2] sm:$0xff]  ;;  %p832_p7 = por %p831_p6, %p830_p5 }
  0x51   :  { %v653_v29 = vpack.c.bf16 %v91_v27, %v90_v26  ;;  %v73_v30 = vld [vmem:[#allocation5] sm:$0xff]  ;;  %v92_v31 = vld [vmem:[#allocation8 + $0x10] sm:$0xff]  ;;  %v94_v34 = vld [vmem:[#allocation8 + $0x20] sm:$0xff] }
  0x52   :  { %633 = vmatpush3.bf16.msra.mxu1 %v632_v7  ;;  %681 = vmatpush3.bf16.msra.mxu0 %v632_v7  ;;  %v93_v32 = vld [vmem:[#allocation8 + $0x18] sm:$0xff]  ;;  %v95_v35 = vld [vmem:[#allocation8 + $0x28] sm:$0xff]  ;;  %v96_v37 = vld [vmem:[#allocation8 + $0x30] sm:$0xff]  ;;  %p833_p8 = pnand %p832_p7, %p826_p4 }
  0x53   :  { %634 = vmatprep.subr.bf16.mxu1 %v885_v0  ;;  %682 = vmatprep.subr.bf16.mxu0 %v885_v0  ;;  %v656_v33 = vpack.c.bf16 %v93_v32, %v92_v31  ;;  %v659_v36 = vpack.c.bf16 %v95_v35, %v94_v34  ;;  %v97_v38 = vld [vmem:[#allocation8 + $0x38] sm:$0xff]  ;;  %v98_v40 = vld [vmem:[#allocation8 + $0x40] sm:$0xff]  ;;  %v99_v41 = vld [vmem:[#allocation8 + $0x48] sm:$0xff] }
  0x54   :  { %v662_v39 = vpack.c.bf16 %v97_v38, %v96_v37  ;;  %v665_v42 = vpack.c.bf16 %v99_v41, %v98_v40  ;;  %v100_v43 = vld [vmem:[#allocation8 + $0x50] sm:$0xff]  ;;  %v101_v44 = vld [vmem:[#allocation8 + $0x58] sm:$0xff]  ;;  %v102_v46 = vld [vmem:[#allocation8 + $0x60] sm:$0xff] }
  0x55   :  { %v668_v45 = vpack.c.bf16 %v101_v44, %v100_v43  ;;  %v103_v47 = vld [vmem:[#allocation8 + $0x68] sm:$0xff]  ;;  %v104_v49 = vld [vmem:[#allocation8 + $0x70] sm:$0xff]  ;;  %v105_v50 = vld [vmem:[#allocation8 + $0x78] sm:$0xff] }
  0x56   :  { %636 = vmatpush3.bf16.msra.mxu1 %v635_v10  ;;  %684 = vmatpush3.bf16.msra.mxu0 %v635_v10  ;;  %v671_v48 = vpack.c.bf16 %v103_v47, %v102_v46  ;;  %v674_v51 = vpack.c.bf16 %v105_v50, %v104_v49 }
  0x57   :  { %637 = vmatprep.subr.bf16.mxu1 %v885_v0  ;;  %685 = vmatprep.subr.bf16.mxu0 %v885_v0 }
  0x5a   :  { %639 = vmatpush3.bf16.msra.mxu1 %v638_v13  ;;  %687 = vmatpush3.bf16.msra.mxu0 %v638_v13 }
  0x5b   :  { %640 = vmatprep.subr.bf16.mxu1 %v885_v0  ;;  %688 = vmatprep.subr.bf16.mxu0 %v885_v0 }
  0x5e   :  { %642 = vmatpush3.bf16.msra.mxu1 %v641_v16  ;;  %690 = vmatpush3.bf16.msra.mxu0 %v641_v16 }
  0x5f   :  { %643 = vmatprep.subr.bf16.mxu1 %v885_v0  ;;  %691 = vmatprep.subr.bf16.mxu0 %v885_v0 }
  0x62   :  { %645 = vmatpush3.bf16.msra.mxu1 %v644_v19  ;;  %693 = vmatpush3.bf16.msra.mxu0 %v644_v19 }
  0x63   :  { %646 = vmatprep.subr.bf16.mxu1 %v885_v0  ;;  %694 = vmatprep.subr.bf16.mxu0 %v885_v0 }
  0x66   :  { %648 = vmatpush3.bf16.msra.mxu1 %v647_v22  ;;  %696 = vmatpush3.bf16.msra.mxu0 %v647_v22 }
  0x67   :  { %649 = vmatprep.subr.bf16.mxu1 %v885_v0  ;;  %697 = vmatprep.subr.bf16.mxu0 %v885_v0 }
  0x6a   :  { %651 = vmatpush3.bf16.msra.mxu1 %v650_v25  ;;  %699 = vmatpush3.bf16.msra.mxu0 %v650_v25 }
  0x6b   :  { %652 = vmatprep.subr.bf16.mxu1 %v885_v0  ;;  %700 = vmatprep.subr.bf16.mxu0 %v885_v0 }
  0x6d   :  { %521 = vmatmul.mubr.f32.vlgmr.msra.gmra.mrb[0].mxu1 %v72_v28  ;;  %591 = vmatmul.mubr.f32.vlgmr.msra.gmra.mrb[0].mxu0 %v73_v30 }
  0x6e   :  { %654 = vmatpush3.bf16.msra.mxu1 %v653_v29  ;;  %702 = vmatpush3.bf16.msra.mxu0 %v653_v29 }
  0x6f   :  { %655 = vmatprep.subr.bf16.mxu1 %v885_v0  ;;  %703 = vmatprep.subr.bf16.mxu0 %v885_v0 }
  0x70   :  { %555 = vmatprep.mubr.msk.f32.mxu1 %vm886_vm0, %v887_v1  ;;  %625 = vmatprep.mubr.msk.f32.mxu0 %vm886_vm0, %v887_v1 }
  0x72   :  { %657 = vmatpush3.bf16.msra.mxu1 %v656_v33  ;;  %705 = vmatpush3.bf16.msra.mxu0 %v656_v33 }
  0x73   :  { %658 = vmatprep.subr.bf16.mxu1 %v885_v0  ;;  %706 = vmatprep.subr.bf16.mxu0 %v885_v0 }
  0x76   :  { %660 = vmatpush3.bf16.msra.mxu1 %v659_v36  ;;  %708 = vmatpush3.bf16.msra.mxu0 %v659_v36 }
  0x77   :  { %661 = vmatprep.subr.bf16.mxu1 %v885_v0  ;;  %709 = vmatprep.subr.bf16.mxu0 %v885_v0 }
  0x7a   :  { %663 = vmatpush3.bf16.msra.mxu1 %v662_v39  ;;  %711 = vmatpush3.bf16.msra.mxu0 %v662_v39 }
  0x7b   :  { %664 = vmatprep.subr.bf16.mxu1 %v885_v0  ;;  %712 = vmatprep.subr.bf16.mxu0 %v885_v0 }
  0x7e   :  { %666 = vmatpush3.bf16.msra.mxu1 %v665_v42  ;;  %714 = vmatpush3.bf16.msra.mxu0 %v665_v42 }
  0x7f   :  { %667 = vmatprep.subr.bf16.mxu1 %v885_v0  ;;  %715 = vmatprep.subr.bf16.mxu0 %v885_v0 }
  0x82   :  { %669 = vmatpush3.bf16.msra.mxu1 %v668_v45  ;;  %717 = vmatpush3.bf16.msra.mxu0 %v668_v45 }
  0x83   :  { %670 = vmatprep.subr.bf16.mxu1 %v885_v0  ;;  %718 = vmatprep.subr.bf16.mxu0 %v885_v0 }
  0x86   :  { %672 = vmatpush3.bf16.msra.mxu1 %v671_v48  ;;  %720 = vmatpush3.bf16.msra.mxu0 %v671_v48 }
  0x87   :  { %673 = vmatprep.subr.bf16.mxu1 %v885_v0  ;;  %721 = vmatprep.subr.bf16.mxu0 %v885_v0 }
  0x8a   :  { %675 = vmatpush3.bf16.msra.mxu1 %v674_v51  ;;  %723 = vmatpush3.bf16.msra.mxu0 %v674_v51 }
  0x8d   :  { %556 = vmatmul.mubr.f32.vlgmr.msra.gmra.mrb[2].mxu1 %v73_v30  ;;  %626 = vmatmul.mubr.f32.vlgmr.msra.gmra.mrb[0].mxu0 %v72_v28 }
 0x140   :  { %v172_v52 = vpop.f32.mrb[0].mxu1 }
 0x141   :  { %v522_v53 = vpop.f32.mrb[1].mxu1 }
 0x160   :  { %v242_v54 = vpop.f32.mrb[2].mxu1  ;;  %v384_v55 = vpop.f32.mrb[0].mxu0 }
 0x161   :  { %v316_v56 = vsub.f32 %v172_v52, %v242_v54  ;;  %388 = vst [vmem:[#allocation11] sm:$0xff] %v384_v55  ;;  %v557_v57 = vpop.f32.mrb[3].mxu1  ;;  %v627_v58 = vpop.f32.mrb[1].mxu0 }
 0x162   :  { %836 = shalt.err (!%p833_p8)
}
 0x163   :  { %s837_s20 = scalar_lea.hbm %s1037_s5, 128 }
 0x164   :  { %p838_p9 = scmp.ne.s32.totalorder %s1037_s5, %s837_s20  ;;  %p841_p10 = scmp.lt.u32.totalorder %s837_s20, %s1037_s5 }
 0x166   :  { %p843_p11 = pnand %p841_p10, %p838_p9 }
 0x168   :  { %846 = shalt.err (!%p843_p11)
}
 0x169   :  { %408 = dma.vmem_to_hbm [thread:$0]  %s406_s1, 128, %s1037_s5, [#allocation12]   ;;  %317 = vst [vmem:[#allocation10] sm:$0xff] %v316_v56 }
 0x16a   :  { %s847_s21 = scalar_lea.vmem %s396_s16, 128  ;;  %p852_p13 = scmp.lt.s32.totalorder %s396_s16, %s396_s16 }
 0x16b   :  { %p848_p12 = scmp.ne.s32.totalorder %s396_s16, %s847_s21  ;;  %p853_p0 = scmp.lt.s32.totalorder %s847_s21, %s847_s21 }
 0x16d   :  { %p854_p1 = por %p853_p0, %p852_p13 }
 0x16f   :  { %p855_p2 = pnand %p854_p1, %p848_p12 }
 0x171   :  { %858 = shalt.err (!%p855_p2)
}
 0x172   :  { %s859_s29 = scalar_lea.hbm %s1036_s4, 128 }
 0x173   :  { %p860_p3 = scmp.ne.s32.totalorder %s1036_s4, %s859_s29  ;;  %p863_p4 = scmp.lt.u32.totalorder %s859_s29, %s1036_s4 }
 0x175   :  { %p865_p5 = pnand %p863_p4, %p860_p3 }
 0x177   :  { %868 = shalt.err (!%p865_p5)
}
 0x178   :  { %398 = dma.vmem_to_hbm [thread:$0]  %s396_s16, 128, %s1036_s4, [#allocation4]  }
 0x179   :  { %875 = dma.done.wait [#allocation4], 128  }
 0x17a   :  { %876 = vsyncadd [#allocation4], 4294967168 }
 0x17b   :  { %877 = dma.done.wait [#allocation12], 128  }
 0x17c   :  { %878 = vsyncadd [#allocation12], 4294967168 }
 0x17d   :  { %415 = vsyncpa [#allocation3], 1 }
 0x17e   :  { %416 = vsyncpa [#allocation6], 1 }
 0x17f   :  { %417 = vsyncpa [#allocation9], 1 }
 0x180   :  { %418 = vsyncpa [#allocation4], 1 }
 0x181   :  { %419 = vsyncpa [#allocation12], 1 }

</bundles_post_ra>
